<compile_context>
chip_gen: v5e
topology: v5e:2x2
jax: 0.10.0
libtpu: 0.0.40
codegen_flags: <defaults>
</compile_context>

<pallas_src>
import functools

import numpy as np
import jax
import jax.numpy as jnp
from jax.experimental import pallas as pl
from jax.experimental.pallas import tpu as pltpu


# ----------------------------------------------------------------------------
# helpers
# ----------------------------------------------------------------------------
def _round_up(x, m):
    return (x + m - 1) // m * m


def _pick_tile(dim_padded, pref):
    """Largest tile <= pref that divides dim_padded (dim_padded % 128 == 0)."""
    t = min(pref, dim_padded)
    while dim_padded % t:
        t -= 128
    return t


def _apply_act(y, act):
    if act == "relu6":
        return jnp.clip(y, 0.0, 6.0)
    if act == "hswish":
        return y * jnp.clip(y + 3.0, 0.0, 6.0) * (1.0 / 6.0)
    return y


# ----------------------------------------------------------------------------
# Pallas kernels:  act( X @ W + bias )   (W already folded with the BN scale)
# ----------------------------------------------------------------------------
def _matmul_bias_act_single_k(x_ref, w_ref, b_ref, o_ref, *, act):
    # K fits in one block: no accumulation phases, no pl.when.
    y = jnp.dot(x_ref[...], w_ref[...], preferred_element_type=jnp.float32)
    o_ref[...] = _apply_act(y + b_ref[...], act)


def _matmul_bias_act_kloop(x_ref, w_ref, b_ref, o_ref, *, act):
    # K is the last grid axis; the f32 output block is resident across it and
    # is used directly as the accumulator (no extra VMEM scratch).
    k = pl.program_id(2)

    @pl.when(k == 0)
    def _init():
        o_ref[...] = jnp.zeros_like(o_ref)

    o_ref[...] += jnp.dot(x_ref[...], w_ref[...],
                          preferred_element_type=jnp.float32)

    @pl.when(k == pl.num_programs(2) - 1)
    def _finish():
        o_ref[...] = _apply_act(o_ref[...] + b_ref[...], act)


def fused_matmul_bias_act(x, w_pad, b_pad, act, n_valid,
                          tm_pref=256, tn_pref=256, tk_pref=256):
    """act(x @ W + b) with a tiled Pallas TPU kernel.

    x      : (M, K)  f32 (unpadded)  -- cast to bf16 here for the MXU.
    w_pad  : (Kp, Np) bf16, pre-padded, BN scale already folded in.
    b_pad  : (1, Np)  f32, pre-padded folded bias.
    Returns (M, n_valid) f32.
    """
    M, K = x.shape
    Kp, Np = w_pad.shape
    assert K <= Kp and n_valid <= Np

    tm = min(tm_pref, _round_up(M, 8))
    tn = _pick_tile(Np, tn_pref)
    tk = _pick_tile(Kp, tk_pref)
    Mp = _round_up(M, tm)
    nm, nn, nk = Mp // tm, Np // tn, Kp // tk

    xp = jnp.pad(x, ((0, Mp - M), (0, Kp - K))).astype(jnp.bfloat16)

    if nk == 1:
        kernel = functools.partial(_matmul_bias_act_single_k, act=act)
        grid = (nm, nn)
        in_specs = [
            pl.BlockSpec((tm, tk), lambda i, j: (i, 0)),
            pl.BlockSpec((tk, tn), lambda i, j: (0, j)),
            pl.BlockSpec((1, tn), lambda i, j: (0, j)),
        ]
        out_specs = pl.BlockSpec((tm, tn), lambda i, j: (i, j))
        dims = ("parallel", "parallel")
    else:
        kernel = functools.partial(_matmul_bias_act_kloop, act=act)
        grid = (nm, nn, nk)
        in_specs = [
            pl.BlockSpec((tm, tk), lambda i, j, k: (i, k)),
            pl.BlockSpec((tk, tn), lambda i, j, k: (k, j)),
            pl.BlockSpec((1, tn), lambda i, j, k: (0, j)),
        ]
        out_specs = pl.BlockSpec((tm, tn), lambda i, j, k: (i, j))
        dims = ("parallel", "parallel", "arbitrary")

    out = pl.pallas_call(
        kernel,
        out_shape=jax.ShapeDtypeStruct((Mp, Np), jnp.float32),
        grid=grid,
        in_specs=in_specs,
        out_specs=out_specs,
        compiler_params=pltpu.CompilerParams(
            dimension_semantics=dims,
            vmem_limit_bytes=32 * 1024 * 1024),
    )(xp, w_pad, b_pad)
    return out[:M, :n_valid]


# ----------------------------------------------------------------------------
# Conv2DBNBlock: glue (im2col / layout) in plain JAX, hot path in Pallas
# ----------------------------------------------------------------------------
def _im2col(x, k, stride):
    """NHWC -> (B*Ho*Wo, k*k*C) patches with PyTorch padding k//2."""
    B, H, W, C = x.shape
    p = k // 2
    Ho = (H + 2 * p - k) // stride + 1
    Wo = (W + 2 * p - k) // stride + 1
    if k == 1 and stride == 1:
        return x.reshape(B * H * W, C), Ho, Wo
    xp = jnp.pad(x, ((0, 0), (p, p), (p, p), (0, 0)))
    cols = []
    for i in range(k):
        for j in range(k):
            cols.append(xp[:, i:i + (Ho - 1) * stride + 1:stride,
                           j:j + (Wo - 1) * stride + 1:stride, :])
    patches = jnp.concatenate(cols, axis=-1)
    return patches.reshape(B * Ho * Wo, k * k * C), Ho, Wo


def conv2d_bn_block_forward(params, x_nchw):
    """Conv2d(k, stride, pad=k//2) -> BatchNorm2d (folded) -> HSwish/ReLU6."""
    k, s = params["kernel_size"], params["stride"]
    x = jnp.transpose(x_nchw.astype(jnp.float32), (0, 2, 3, 1))     # NCHW -> NHWC
    B = x.shape[0]
    patches, Ho, Wo = _im2col(x, k, s)
    y = fused_matmul_bias_act(patches, params["w_pad"], params["b_pad"],
                              params["act"], params["out_channels"])
    y = y.reshape(B, Ho, Wo, params["out_channels"])
    return jnp.transpose(y, (0, 3, 1, 2))                           # NHWC -> NCHW


def make_conv2d_bn_block_params(key, in_channels, out_channels, kernel_size=3,
                                stride=1, use_bias=False, activation="relu"):
    """Synthetic Conv2DBNBlock parameters with BN folded and weights pre-padded."""
    k = kernel_size
    fan_in = k * k * in_channels
    keys = jax.random.split(key, 6)
    w_conv = jax.random.normal(keys[0], (out_channels, in_channels, k, k),
                               jnp.float32) / np.sqrt(fan_in)
    b_conv = (0.05 * jax.random.normal(keys[1], (out_channels,), jnp.float32)
              if use_bias else jnp.zeros((out_channels,), jnp.float32))
    # BatchNorm2d inference statistics, eps = 1e-5
    gamma = 1.0 + 0.05 * jax.random.normal(keys[2], (out_channels,), jnp.float32)
    beta = 0.05 * jax.random.normal(keys[3], (out_channels,), jnp.float32)
    mean = 0.05 * jax.random.normal(keys[4], (out_channels,), jnp.float32)
    var = jnp.abs(1.0 + 0.05 * jax.random.normal(keys[5], (out_channels,),
                                                 jnp.float32))

    scale = gamma * jax.lax.rsqrt(var + 1e-5)
    bias = beta + (b_conv - mean) * scale

    # Conv weight (O,I,kh,kw) -> im2col matrix rows ordered (tap i, tap j, cin)
    w_mat = jnp.transpose(w_conv, (2, 3, 1, 0)).reshape(fan_in, out_channels)
    w_mat = w_mat * scale[None, :]                       # fold BN scale into W
    Kp = _round_up(fan_in, 128)
    Np = _round_up(out_channels, 128)
    w_pad = jnp.pad(w_mat, ((0, Kp - fan_in),
                            (0, Np - out_channels))).astype(jnp.bfloat16)
    b_pad = jnp.pad(bias, (0, Np - out_channels)).reshape(1, Np)

    act = "hswish" if activation == "hswish" else "relu6"
    return {"w_pad": w_pad, "b_pad": b_pad, "act": act,
            "kernel_size": k, "stride": stride, "out_channels": out_channels,
            # unfolded copies kept only for the f32 reference check
            "w_conv": w_conv, "scale": scale, "bias": bias}


def _reference_block(params, x_nchw):
    """Pure-JAX f32 reference of Conv2DBNBlock.forward (correctness check)."""
    k, s = params["kernel_size"], params["stride"]
    p = k // 2
    y = jax.lax.conv_general_dilated(
        x_nchw.astype(jnp.float32), params["w_conv"],
        window_strides=(s, s), padding=[(p, p), (p, p)],
        dimension_numbers=("NCHW", "OIHW", "NCHW"))
    y = y * params["scale"][None, :, None, None] + params["bias"][None, :, None, None]
    return _apply_act(y, params["act"])


# ----------------------------------------------------------------------------
if __name__ == "__main__":
    key = jax.random.PRNGKey(0)
    kp1, kp2, kx = jax.random.split(key, 3)

    # Two Conv2DBNBlocks: (hswish, stride 1) and (relu->ReLU6, stride 2), so the
    # single-K-block kernel and the K-loop kernel are both exercised.
    params1 = make_conv2d_bn_block_params(kp1, 4, 32, kernel_size=3, stride=1,
                                          use_bias=False, activation="hswish")
    params2 = make_conv2d_bn_block_params(kp2, 32, 64, kernel_size=3, stride=2,
                                          use_bias=False, activation="relu")

    x = jax.random.normal(kx, (2, 4, 16, 16), jnp.float32)   # NCHW, like PyTorch

    @jax.jit
    def model(inp):
        y = conv2d_bn_block_forward(params1, inp)
        return conv2d_bn_block_forward(params2, y)

    out = model(x)
    jax.block_until_ready(out)

    assert out.shape == (2, 64, 8, 8), out.shape
    assert bool(jnp.all(jnp.isfinite(out)))

    # Validate against the pure f32 reference (bf16 MXU inputs -> loose tol).
    ref = _reference_block(params2, _reference_block(params1, x))
    max_err = float(jnp.max(jnp.abs(out - ref)))
    assert max_err < 0.1, f"max abs error vs f32 reference: {max_err}"

    print("KERNEL_OK")
</pallas_src>

<mosaic_0001>
module attributes {stable_mosaic.version = 11 : i64} {
  func.func @_matmul_bias_act_single_k(%arg0: i32, %arg1: i32, %arg2: memref<256x128xbf16, #tpu.memory_space<vmem>>, %arg3: memref<128x128xbf16, #tpu.memory_space<vmem>>, %arg4: memref<1x128xf32, #tpu.memory_space<vmem>>, %arg5: memref<256x128xf32, #tpu.memory_space<vmem>>) attributes {dimension_semantics = [#tpu.dimension_semantics<parallel>, #tpu.dimension_semantics<parallel>], iteration_bounds = array<i64: 2, 1>, scalar_prefetch = 0 : i64, scratch_operands = 0 : i64, tpu.core_type = #tpu.core_type<tc>, window_params = [{transform_indices = @transform_0, window_bounds = array<i64: 256, 128>}, {transform_indices = @transform_1, window_bounds = array<i64: 128, 128>}, {transform_indices = @transform_2, window_bounds = array<i64: 1, 128>}, {transform_indices = @transform_3, window_bounds = array<i64: 256, 128>}]} {
    %c0 = arith.constant 0 : index
    %c0_0 = arith.constant 0 : index
    %0 = vector.load %arg2[%c0, %c0_0] : memref<256x128xbf16, #tpu.memory_space<vmem>>, vector<256x128xbf16>
    %c0_1 = arith.constant 0 : index
    %c0_2 = arith.constant 0 : index
    %1 = vector.load %arg3[%c0_1, %c0_2] : memref<128x128xbf16, #tpu.memory_space<vmem>>, vector<128x128xbf16>
    %cst = arith.constant dense<0.000000e+00> : vector<256x128xf32>
    %2 = tpu.matmul %0, %1, %cst {dimension_numbers = #tpu.dot_dimension_numbers<[1], [0], [0], [1], [0, 0, 1, 1], [], []>} : vector<256x128xbf16>, vector<128x128xbf16>, vector<256x128xf32> -> vector<256x128xf32>
    %c0_3 = arith.constant 0 : index
    %c0_4 = arith.constant 0 : index
    %3 = vector.load %arg4[%c0_3, %c0_4] : memref<1x128xf32, #tpu.memory_space<vmem>>, vector<1x128xf32>
    %4 = vector.broadcast %3 : vector<1x128xf32> to vector<256x128xf32>
    %5 = arith.addf %2, %4 : vector<256x128xf32>
    %cst_5 = arith.constant 3.000000e+00 : f32
    %6 = vector.broadcast %cst_5 : f32 to vector<256x128xf32>
    %7 = arith.addf %5, %6 : vector<256x128xf32>
    %cst_6 = arith.constant 0.000000e+00 : f32
    %cst_7 = arith.constant 6.000000e+00 : f32
    %8 = vector.broadcast %cst_6 : f32 to vector<256x128xf32>
    %9 = arith.maximumf %8, %7 : vector<256x128xf32>
    %10 = vector.broadcast %cst_7 : f32 to vector<256x128xf32>
    %11 = arith.minimumf %10, %9 : vector<256x128xf32>
    %12 = arith.mulf %5, %11 : vector<256x128xf32>
    %cst_8 = arith.constant 0.166666672 : f32
    %13 = vector.broadcast %cst_8 : f32 to vector<256x128xf32>
    %14 = arith.mulf %12, %13 : vector<256x128xf32>
    %c0_9 = arith.constant 0 : index
    %c0_10 = arith.constant 0 : index
    %15 = vector.load %arg5[%c0_9, %c0_10] : memref<256x128xf32, #tpu.memory_space<vmem>>, vector<256x128xf32>
    tpu.vector_store %arg5[%c0_9, %c0_10], %14 {strides = array<i32>} : memref<256x128xf32, #tpu.memory_space<vmem>>, vector<256x128xf32>,
    return
  }
  func.func @transform_0(%arg0: i32, %arg1: i32) -> (i32, i32) {
    %c0_i32 = arith.constant 0 : i32
    %c0_i32_0 = arith.constant 0 : i32
    return %arg0, %c0_i32 : i32, i32
  }
  func.func @transform_1(%arg0: i32, %arg1: i32) -> (i32, i32) {
    %c0_i32 = arith.constant 0 : i32
    %c0_i32_0 = arith.constant 0 : i32
    return %c0_i32, %arg1 : i32, i32
  }
  func.func @transform_2(%arg0: i32, %arg1: i32) -> (i32, i32) {
    %c0_i32 = arith.constant 0 : i32
    %c0_i32_0 = arith.constant 0 : i32
    return %c0_i32, %arg1 : i32, i32
  }
  func.func @transform_3(%arg0: i32, %arg1: i32) -> (i32, i32) {
    %c0_i32 = arith.constant 0 : i32
    return %arg0, %arg1 : i32, i32
  }
}

module attributes {stable_mosaic.version = 11 : i64} {
  func.func @_matmul_bias_act_kloop(%arg0: i32, %arg1: i32, %arg2: i32, %arg3: memref<128x128xbf16, #tpu.memory_space<vmem>>, %arg4: memref<128x128xbf16, #tpu.memory_space<vmem>>, %arg5: memref<1x128xf32, #tpu.memory_space<vmem>>, %arg6: memref<128x128xf32, #tpu.memory_space<vmem>>) attributes {dimension_semantics = [#tpu.dimension_semantics<parallel>, #tpu.dimension_semantics<parallel>, #tpu.dimension_semantics<arbitrary>], iteration_bounds = array<i64: 1, 1, 3>, scalar_prefetch = 0 : i64, scratch_operands = 0 : i64, tpu.core_type = #tpu.core_type<tc>, window_params = [{transform_indices = @transform_0, window_bounds = array<i64: 128, 128>}, {transform_indices = @transform_1, window_bounds = array<i64: 128, 128>}, {transform_indices = @transform_2, window_bounds = array<i64: 1, 128>}, {transform_indices = @transform_3, window_bounds = array<i64: 128, 128>}]} {
    %c0_i32 = arith.constant 0 : i32
    %0 = arith.cmpi eq, %arg2, %c0_i32 : i32
    %1 = arith.extui %0 : i1 to i32
    %c0_i32_0 = arith.constant 0 : i32
    %2 = arith.cmpi ne, %1, %c0_i32_0 : i32
    scf.if %2 {
      %cst_9 = arith.constant 0.000000e+00 : f32
      %12 = vector.broadcast %cst_9 : f32 to vector<128x128xf32>
      %c0_10 = arith.constant 0 : index
      %c0_11 = arith.constant 0 : index
      %13 = vector.load %arg6[%c0_10, %c0_11] : memref<128x128xf32, #tpu.memory_space<vmem>>, vector<128x128xf32>
      tpu.vector_store %arg6[%c0_10, %c0_11], %12 {strides = array<i32>} : memref<128x128xf32, #tpu.memory_space<vmem>>, vector<128x128xf32>,
    } else {
    }
    %c0 = arith.constant 0 : index
    %c0_1 = arith.constant 0 : index
    %3 = vector.load %arg6[%c0, %c0_1] : memref<128x128xf32, #tpu.memory_space<vmem>>, vector<128x128xf32>
    %c0_2 = arith.constant 0 : index
    %c0_3 = arith.constant 0 : index
    %4 = vector.load %arg3[%c0_2, %c0_3] : memref<128x128xbf16, #tpu.memory_space<vmem>>, vector<128x128xbf16>
    %c0_4 = arith.constant 0 : index
    %c0_5 = arith.constant 0 : index
    %5 = vector.load %arg4[%c0_4, %c0_5] : memref<128x128xbf16, #tpu.memory_space<vmem>>, vector<128x128xbf16>
    %cst = arith.constant dense<0.000000e+00> : vector<128x128xf32>
    %6 = tpu.matmul %4, %5, %cst {dimension_numbers = #tpu.dot_dimension_numbers<[1], [0], [0], [1], [0, 0, 1, 1], [], []>} : vector<128x128xbf16>, vector<128x128xbf16>, vector<128x128xf32> -> vector<128x128xf32>
    %7 = arith.addf %3, %6 : vector<128x128xf32>
    %c0_6 = arith.constant 0 : index
    %c0_7 = arith.constant 0 : index
    %8 = vector.load %arg6[%c0_6, %c0_7] : memref<128x128xf32, #tpu.memory_space<vmem>>, vector<128x128xf32>
    tpu.vector_store %arg6[%c0_6, %c0_7], %7 {strides = array<i32>} : memref<128x128xf32, #tpu.memory_space<vmem>>, vector<128x128xf32>,
    %c2_i32 = arith.constant 2 : i32
    %9 = arith.cmpi eq, %arg2, %c2_i32 : i32
    %10 = arith.extui %9 : i1 to i32
    %c0_i32_8 = arith.constant 0 : i32
    %11 = arith.cmpi ne, %10, %c0_i32_8 : i32
    scf.if %11 {
      %c0_9 = arith.constant 0 : index
      %c0_10 = arith.constant 0 : index
      %12 = vector.load %arg6[%c0_9, %c0_10] : memref<128x128xf32, #tpu.memory_space<vmem>>, vector<128x128xf32>
      %c0_11 = arith.constant 0 : index
      %c0_12 = arith.constant 0 : index
      %13 = vector.load %arg5[%c0_11, %c0_12] : memref<1x128xf32, #tpu.memory_space<vmem>>, vector<1x128xf32>
      %14 = vector.broadcast %13 : vector<1x128xf32> to vector<128x128xf32>
      %15 = arith.addf %12, %14 : vector<128x128xf32>
      %cst_13 = arith.constant 0.000000e+00 : f32
      %cst_14 = arith.constant 6.000000e+00 : f32
      %16 = vector.broadcast %cst_13 : f32 to vector<128x128xf32>
      %17 = arith.maximumf %16, %15 : vector<128x128xf32>
      %18 = vector.broadcast %cst_14 : f32 to vector<128x128xf32>
      %19 = arith.minimumf %18, %17 : vector<128x128xf32>
      %c0_15 = arith.constant 0 : index
      %c0_16 = arith.constant 0 : index
      %20 = vector.load %arg6[%c0_15, %c0_16] : memref<128x128xf32, #tpu.memory_space<vmem>>, vector<128x128xf32>
      tpu.vector_store %arg6[%c0_15, %c0_16], %19 {strides = array<i32>} : memref<128x128xf32, #tpu.memory_space<vmem>>, vector<128x128xf32>,
    } else {
    }
    return
  }
  func.func @transform_0(%arg0: i32, %arg1: i32, %arg2: i32) -> (i32, i32) {
    %c0_i32 = arith.constant 0 : i32
    return %arg0, %arg2 : i32, i32
  }
  func.func @transform_1(%arg0: i32, %arg1: i32, %arg2: i32) -> (i32, i32) {
    %c0_i32 = arith.constant 0 : i32
    return %arg2, %arg1 : i32, i32
  }
  func.func @transform_2(%arg0: i32, %arg1: i32, %arg2: i32) -> (i32, i32) {
    %c0_i32 = arith.constant 0 : i32
    %c0_i32_0 = arith.constant 0 : i32
    return %c0_i32, %arg1 : i32, i32
  }
  func.func @transform_3(%arg0: i32, %arg1: i32, %arg2: i32) -> (i32, i32) {
    %c0_i32 = arith.constant 0 : i32
    return %arg0, %arg1 : i32, i32
  }
}

</mosaic_0001>

<bundles_post_ra>
// kernel: model.2
= control target key start
LH: loop header
LB: loop body
LE: loop exit
PB: predicated region body
PF: predicated region fallthrough
CT: control target
= control target key end

     0   :  { %s1030_s12 = smov 0   ;;  %s1032_s13 = smov 0   ;;  %s1183_s0 = inlined_call_operand.vmem [shape: bf16[512,128], index: 0, kind: input, shape index: {}]   ;;  %s1184_s1 = inlined_call_operand.vmem [shape: bf16[128,128], index: 1, kind: input, shape index: {}]   ;;  %s1185_s2 = inlined_call_operand.vmem [shape: f32[1,128], index: 2, kind: input, shape index: {}]   ;;  %s1186_s3 = inlined_call_operand.vmem [shape: f32[512,128], index: 3, kind: output, shape index: {}]  }
   0x1   :  { %s1034_s14 = smov 0  }
   0x2 LB: > { %s25_s15 = sadd.s32 1, %s1004_s13  ;;  %p810_p0 = scmp.ge.s32.totalorder %s1008_s14, 1  ;;  %s1008_s14 = sphi %s1034_s14, %s13_s14   ;;  %s1004_s13 = sphi %s1032_s13, %s1188_s13   ;;  %s1000_s12 = sphi %s1030_s12, %s1187_s12  }
   0x3   : > { %p27_p1 = scmp.ge.s32.totalorder %s25_s15, 2  ;;  %p169_p2 = scmp.lt.s32.totalorder %s1008_s14, 3 }
   0x5   : > { %s1190_s15 = smov (%p27_p1, %s25_s15), 0  ;;  %p170_p3 = pnand %p810_p0, %p169_p2 }
   0x6   : > { %s811_s24 = sshll.u32 (!%p170_p3), %s1000_s12, 5 }
   0x7   : > { %173 = sbr.rel (%p170_p3) target bundleno = 247 (0xf7), region = 32  ;;  %p204_p4 = scmp.lt.s32.totalorder (!%p170_p3), %s811_s24, 63 }
   0xc   : > { %v936_v0 = vld [vmem:[%s1184_s1 + $0x38] sm:$0xff]  ;;  %v935_v1 = vld [vmem:[%s1184_s1 + $0x30] sm:$0xff]  ;;  %v934_v2 = vld [vmem:[%s1184_s1 + $0x28] sm:$0xff]  ;;  %s1192_s24 = smov (!%p204_p4, %s811_s24), 63 }
   0xd   : > { %421 = vmatpush.bf16.msra.mxu0 %v936_v0  ;;  %937 = vmatpush.bf16.msra.mxu1 %v936_v0  ;;  %v933_v3 = vld [vmem:[%s1184_s1 + $0x20] sm:$0xff]  ;;  %v932_v4 = vld [vmem:[%s1184_s1 + $0x18] sm:$0xff]  ;;  %v931_v5 = vld [vmem:[%s1184_s1 + $0x10] sm:$0xff]  ;;  %s812_s4 = sshll.u32 %s1192_s24, 2  ;;  %s814_s12 = sshll.u32 %s1192_s24, 3 }
   0xe   : > { %938 = vmatpush.bf16.msra.mxu2 %v936_v0  ;;  %939 = vmatpush.bf16.msra.mxu3 %v936_v0  ;;  %v930_v6 = vld [vmem:[%s1184_s1 + $0x8] sm:$0xff]  ;;  %v929_v7 = vld [vmem:[%s1184_s1] sm:$0xff]  ;;  %s1081_s9 = scalar_lea.vmem %s1183_s0, %s812_s4  ;;  %s1114_s18 = scalar_lea.vmem %s1186_s3, %s814_s12 }
   0xf   : > { %v913_v8 = vld [vmem:[%s1081_s9] sm:$0xff]  ;;  %v914_v12 = vld [vmem:[%s1081_s9 + $0x8] sm:$0xff]  ;;  %v915_v16 = vld [vmem:[%s1081_s9 + $0x10] sm:$0xff] }
  0x10   : > { %v917_v9 = vld [vmem:[%s1081_s9 + $0x20] sm:$0xff]  ;;  %v918_v13 = vld [vmem:[%s1081_s9 + $0x28] sm:$0xff]  ;;  %v919_v17 = vld [vmem:[%s1081_s9 + $0x30] sm:$0xff] }
  0x11   : > { %422 = vmatpush.bf16.msra.mxu0 %v935_v1  ;;  %940 = vmatpush.bf16.msra.mxu1 %v935_v1  ;;  %v921_v10 = vld [vmem:[%s1081_s9 + $0x40] sm:$0xff]  ;;  %v922_v14 = vld [vmem:[%s1081_s9 + $0x48] sm:$0xff]  ;;  %v923_v18 = vld [vmem:[%s1081_s9 + $0x50] sm:$0xff] }
  0x12   : > { %941 = vmatpush.bf16.msra.mxu2 %v935_v1  ;;  %942 = vmatpush.bf16.msra.mxu3 %v935_v1  ;;  %v925_v11 = vld [vmem:[%s1081_s9 + $0x60] sm:$0xff]  ;;  %v926_v15 = vld [vmem:[%s1081_s9 + $0x68] sm:$0xff]  ;;  %v927_v19 = vld [vmem:[%s1081_s9 + $0x70] sm:$0xff] }
  0x13   : > { %v916_v20 = vld [vmem:[%s1081_s9 + $0x18] sm:$0xff]  ;;  %v1102_v24 = vld [vmem:[%s1185_s2] ss:$0 sm:$0xff] }
  0x14   : > { %v920_v21 = vld [vmem:[%s1081_s9 + $0x38] sm:$0xff] }
  0x15   : > { %423 = vmatpush.bf16.msra.mxu0 %v934_v2  ;;  %943 = vmatpush.bf16.msra.mxu1 %v934_v2  ;;  %v924_v22 = vld [vmem:[%s1081_s9 + $0x58] sm:$0xff] }
  0x16   : > { %944 = vmatpush.bf16.msra.mxu2 %v934_v2  ;;  %945 = vmatpush.bf16.msra.mxu3 %v934_v2  ;;  %v928_v23 = vld [vmem:[%s1081_s9 + $0x78] sm:$0xff] }
  0x19   : > { %424 = vmatpush.bf16.msra.mxu0 %v933_v3  ;;  %946 = vmatpush.bf16.msra.mxu1 %v933_v3 }
  0x1a   : > { %947 = vmatpush.bf16.msra.mxu2 %v933_v3  ;;  %948 = vmatpush.bf16.msra.mxu3 %v933_v3 }
  0x1d   : > { %425 = vmatpush.bf16.msra.mxu0 %v932_v4  ;;  %949 = vmatpush.bf16.msra.mxu1 %v932_v4 }
  0x1e   : > { %950 = vmatpush.bf16.msra.mxu2 %v932_v4  ;;  %951 = vmatpush.bf16.msra.mxu3 %v932_v4 }
  0x21   : > { %426 = vmatpush.bf16.msra.mxu0 %v931_v5  ;;  %952 = vmatpush.bf16.msra.mxu1 %v931_v5 }
  0x22   : > { %953 = vmatpush.bf16.msra.mxu2 %v931_v5  ;;  %954 = vmatpush.bf16.msra.mxu3 %v931_v5 }
  0x25   : > { %427 = vmatpush.bf16.msra.mxu0 %v930_v6  ;;  %955 = vmatpush.bf16.msra.mxu1 %v930_v6 }
  0x26   : > { %956 = vmatpush.bf16.msra.mxu2 %v930_v6  ;;  %957 = vmatpush.bf16.msra.mxu3 %v930_v6 }
  0x29   : > { %428 = vmatpush.bf16.msra.mxu0 %v929_v7  ;;  %958 = vmatpush.bf16.msra.mxu1 %v929_v7 }
  0x2a   : > { %959 = vmatpush.bf16.msra.mxu2 %v929_v7  ;;  %960 = vmatpush.bf16.msra.mxu3 %v929_v7 }
  0x2c   : > { %429 = vmatmul.bf16.vlgmr.msra.gmra.mxu0 %v913_v8  ;;  %449 = vmatmul.bf16.vlgmr.msra.gmra.mxu1 %v917_v9 }
  0x2d   : > { %469 = vmatmul.bf16.vlgmr.msra.gmra.mxu2 %v921_v10  ;;  %489 = vmatmul.bf16.vlgmr.msra.gmra.mxu3 %v925_v11 }
  0x3c   : > { %434 = vmatmul.bf16.gmra.mxu0 %v914_v12  ;;  %454 = vmatmul.bf16.gmra.mxu1 %v918_v13 }
  0x3d   : > { %474 = vmatmul.bf16.gmra.mxu2 %v922_v14  ;;  %494 = vmatmul.bf16.gmra.mxu3 %v926_v15 }
  0x4c   : > { %439 = vmatmul.bf16.gmra.mxu0 %v915_v16  ;;  %459 = vmatmul.bf16.gmra.mxu1 %v919_v17 }
  0x4d   : > { %479 = vmatmul.bf16.gmra.mxu2 %v923_v18  ;;  %499 = vmatmul.bf16.gmra.mxu3 %v927_v19 }
  0x5c   : > { %444 = vmatmul.bf16.gmra.mxu0 %v916_v20  ;;  %464 = vmatmul.bf16.gmra.mxu1 %v920_v21 }
  0x5d   : > { %484 = vmatmul.bf16.gmra.mxu2 %v924_v22  ;;  %504 = vmatmul.bf16.gmra.mxu3 %v928_v23 }
  0xa9   : > { %v430_v25 = vpop.f32.mrf.mxu0  ;;  %v450_v26 = vpop.f32.mrf.mxu1 }
  0xaa   : > { %v431_v27 = vadd.f32 %v1102_v24, %v430_v25  ;;  %v451_v28 = vadd.f32 %v1102_v24, %v450_v26 }
  0xac   : > { %v510_v29 = vadd.f32 3.0, %v431_v27  ;;  %v518_v30 = vadd.f32 3.0, %v451_v28 }
  0xae   : > { %v542_v31 = vmax.f32 %v510_v29, 0.0  ;;  %v550_v32 = vmax.f32 %v518_v30, 0.0 }
  0xb0   : > { %v574_v33 = vmin.f32 %v542_v31, 6.0  ;;  %v582_v34 = vmin.f32 %v550_v32, 6.0  ;;  %v470_v35 = vpop.f32.mrf.mxu2  ;;  %v490_v36 = vpop.f32.mrf.mxu3 }
  0xb1   : > { %v471_v37 = vadd.f32 %v1102_v24, %v470_v35  ;;  %v491_v38 = vadd.f32 %v1102_v24, %v490_v36  ;;  %v432_v39 = vpop.f32.mrf.mxu0  ;;  %v452_v40 = vpop.f32.mrf.mxu1 }
  0xb2   : > { %v606_v41 = vmul.f32 %v574_v33, %v431_v27  ;;  %v614_v42 = vmul.f32 %v582_v34, %v451_v28  ;;  %v433_v43 = vadd.f32 %v1102_v24, %v432_v39  ;;  %v453_v44 = vadd.f32 %v1102_v24, %v452_v40 }
  0xb3   : > { %v526_v45 = vadd.f32 3.0, %v471_v37  ;;  %v534_v46 = vadd.f32 3.0, %v491_v38 }
  0xb4   : > { %v638_v47 = vmul.f32 0.16666667, %v606_v41  ;;  %v646_v48 = vmul.f32 0.16666667, %v614_v42  ;;  %v511_v49 = vadd.f32 3.0, %v433_v43  ;;  %v519_v50 = vadd.f32 3.0, %v453_v44 }
  0xb5   : > { %v558_v51 = vmax.f32 %v526_v45, 0.0  ;;  %v566_v52 = vmax.f32 %v534_v46, 0.0 }
  0xb6   : > { %670 = vst [vmem:[%s1114_s18] sm:$0xff] %v638_v47  ;;  %v543_v53 = vmax.f32 %v511_v49, 0.0  ;;  %v551_v54 = vmax.f32 %v519_v50, 0.0 }
  0xb7   : > { %678 = vst [vmem:[%s1114_s18 + $0x40] sm:$0xff] %v646_v48  ;;  %v590_v55 = vmin.f32 %v558_v51, 6.0  ;;  %v598_v56 = vmin.f32 %v566_v52, 6.0 }
  0xb8   : > { %v575_v57 = vmin.f32 %v543_v53, 6.0  ;;  %v583_v58 = vmin.f32 %v551_v54, 6.0  ;;  %v472_v59 = vpop.f32.mrf.mxu2  ;;  %v492_v60 = vpop.f32.mrf.mxu3 }
  0xb9   : > { %v622_v61 = vmul.f32 %v590_v55, %v471_v37  ;;  %v630_v62 = vmul.f32 %v598_v56, %v491_v38  ;;  %v473_v63 = vadd.f32 %v1102_v24, %v472_v59  ;;  %v493_v0 = vadd.f32 %v1102_v24, %v492_v60  ;;  %v435_v1 = vpop.f32.mrf.mxu0  ;;  %v455_v2 = vpop.f32.mrf.mxu1 }
  0xba   : > { %v607_v3 = vmul.f32 %v575_v57, %v433_v43  ;;  %v615_v4 = vmul.f32 %v583_v58, %v453_v44  ;;  %v436_v5 = vadd.f32 %v1102_v24, %v435_v1  ;;  %v456_v6 = vadd.f32 %v1102_v24, %v455_v2 }
  0xbb   : > { %v654_v7 = vmul.f32 0.16666667, %v622_v61  ;;  %v662_v8 = vmul.f32 0.16666667, %v630_v62  ;;  %v527_v9 = vadd.f32 3.0, %v473_v63  ;;  %v535_v10 = vadd.f32 3.0, %v493_v0 }
  0xbc   : > { %v639_v11 = vmul.f32 0.16666667, %v607_v3  ;;  %v647_v12 = vmul.f32 0.16666667, %v615_v4  ;;  %v512_v13 = vadd.f32 3.0, %v436_v5  ;;  %v520_v14 = vadd.f32 3.0, %v456_v6 }
  0xbd   : > { %686 = vst [vmem:[%s1114_s18 + $0x80] sm:$0xff] %v654_v7  ;;  %v559_v15 = vmax.f32 %v527_v9, 0.0  ;;  %v567_v16 = vmax.f32 %v535_v10, 0.0 }
  0xbe   : > { %694 = vst [vmem:[%s1114_s18 + $0xc0] sm:$0xff] %v662_v8  ;;  %v544_v17 = vmax.f32 %v512_v13, 0.0  ;;  %v552_v18 = vmax.f32 %v520_v14, 0.0 }
  0xbf   : > { %671 = vst [vmem:[%s1114_s18 + $0x8] sm:$0xff] %v639_v11  ;;  %v591_v19 = vmin.f32 %v559_v15, 6.0  ;;  %v599_v20 = vmin.f32 %v567_v16, 6.0 }
  0xc0   : > { %679 = vst [vmem:[%s1114_s18 + $0x48] sm:$0xff] %v647_v12  ;;  %v576_v21 = vmin.f32 %v544_v17, 6.0  ;;  %v584_v22 = vmin.f32 %v552_v18, 6.0  ;;  %v475_v23 = vpop.f32.mrf.mxu2  ;;  %v495_v25 = vpop.f32.mrf.mxu3 }
  0xc1   : > { %v623_v26 = vmul.f32 %v591_v19, %v473_v63  ;;  %v631_v27 = vmul.f32 %v599_v20, %v493_v0  ;;  %v476_v28 = vadd.f32 %v1102_v24, %v475_v23  ;;  %v496_v29 = vadd.f32 %v1102_v24, %v495_v25  ;;  %v437_v30 = vpop.f32.mrf.mxu0  ;;  %v457_v31 = vpop.f32.mrf.mxu1 }
  0xc2   : > { %v608_v32 = vmul.f32 %v576_v21, %v436_v5  ;;  %v616_v33 = vmul.f32 %v584_v22, %v456_v6  ;;  %v438_v34 = vadd.f32 %v1102_v24, %v437_v30  ;;  %v458_v35 = vadd.f32 %v1102_v24, %v457_v31 }
  0xc3   : > { %v655_v36 = vmul.f32 0.16666667, %v623_v26  ;;  %v663_v37 = vmul.f32 0.16666667, %v631_v27  ;;  %v528_v38 = vadd.f32 3.0, %v476_v28  ;;  %v536_v39 = vadd.f32 3.0, %v496_v29 }
  0xc4   : > { %v640_v40 = vmul.f32 0.16666667, %v608_v32  ;;  %v648_v41 = vmul.f32 0.16666667, %v616_v33  ;;  %v513_v42 = vadd.f32 3.0, %v438_v34  ;;  %v521_v43 = vadd.f32 3.0, %v458_v35 }
  0xc5   : > { %687 = vst [vmem:[%s1114_s18 + $0x88] sm:$0xff] %v655_v36  ;;  %v560_v44 = vmax.f32 %v528_v38, 0.0  ;;  %v568_v45 = vmax.f32 %v536_v39, 0.0 }
  0xc6   : > { %695 = vst [vmem:[%s1114_s18 + $0xc8] sm:$0xff] %v663_v37  ;;  %v545_v46 = vmax.f32 %v513_v42, 0.0  ;;  %v553_v47 = vmax.f32 %v521_v43, 0.0 }
  0xc7   : > { %672 = vst [vmem:[%s1114_s18 + $0x10] sm:$0xff] %v640_v40  ;;  %v592_v48 = vmin.f32 %v560_v44, 6.0  ;;  %v600_v49 = vmin.f32 %v568_v45, 6.0 }
  0xc8   : > { %680 = vst [vmem:[%s1114_s18 + $0x50] sm:$0xff] %v648_v41  ;;  %v577_v50 = vmin.f32 %v545_v46, 6.0  ;;  %v585_v51 = vmin.f32 %v553_v47, 6.0  ;;  %v477_v52 = vpop.f32.mrf.mxu2  ;;  %v497_v53 = vpop.f32.mrf.mxu3 }
  0xc9   : > { %v624_v54 = vmul.f32 %v592_v48, %v476_v28  ;;  %v632_v55 = vmul.f32 %v600_v49, %v496_v29  ;;  %v478_v56 = vadd.f32 %v1102_v24, %v477_v52  ;;  %v498_v57 = vadd.f32 %v1102_v24, %v497_v53  ;;  %v440_v58 = vpop.f32.mrf.mxu0  ;;  %v460_v59 = vpop.f32.mrf.mxu1 }
  0xca   : > { %v609_v60 = vmul.f32 %v577_v50, %v438_v34  ;;  %v617_v61 = vmul.f32 %v585_v51, %v458_v35  ;;  %v441_v62 = vadd.f32 %v1102_v24, %v440_v58  ;;  %v461_v63 = vadd.f32 %v1102_v24, %v460_v59 }
  0xcb   : > { %v656_v0 = vmul.f32 0.16666667, %v624_v54  ;;  %v664_v1 = vmul.f32 0.16666667, %v632_v55  ;;  %v529_v2 = vadd.f32 3.0, %v478_v56  ;;  %v537_v3 = vadd.f32 3.0, %v498_v57 }
  0xcc   : > { %v641_v4 = vmul.f32 0.16666667, %v609_v60  ;;  %v649_v5 = vmul.f32 0.16666667, %v617_v61  ;;  %v514_v6 = vadd.f32 3.0, %v441_v62  ;;  %v522_v7 = vadd.f32 3.0, %v461_v63 }
  0xcd   : > { %688 = vst [vmem:[%s1114_s18 + $0x90] sm:$0xff] %v656_v0  ;;  %v561_v8 = vmax.f32 %v529_v2, 0.0  ;;  %v569_v9 = vmax.f32 %v537_v3, 0.0 }
  0xce   : > { %696 = vst [vmem:[%s1114_s18 + $0xd0] sm:$0xff] %v664_v1  ;;  %v546_v10 = vmax.f32 %v514_v6, 0.0  ;;  %v554_v11 = vmax.f32 %v522_v7, 0.0 }
  0xcf   : > { %673 = vst [vmem:[%s1114_s18 + $0x18] sm:$0xff] %v641_v4  ;;  %v593_v12 = vmin.f32 %v561_v8, 6.0  ;;  %v601_v13 = vmin.f32 %v569_v9, 6.0 }
  0xd0   : > { %681 = vst [vmem:[%s1114_s18 + $0x58] sm:$0xff] %v649_v5  ;;  %v578_v14 = vmin.f32 %v546_v10, 6.0  ;;  %v586_v15 = vmin.f32 %v554_v11, 6.0  ;;  %v480_v16 = vpop.f32.mrf.mxu2  ;;  %v500_v17 = vpop.f32.mrf.mxu3 }
  0xd1   : > { %v625_v18 = vmul.f32 %v593_v12, %v478_v56  ;;  %v633_v19 = vmul.f32 %v601_v13, %v498_v57  ;;  %v481_v20 = vadd.f32 %v1102_v24, %v480_v16  ;;  %v501_v21 = vadd.f32 %v1102_v24, %v500_v17  ;;  %v442_v22 = vpop.f32.mrf.mxu0  ;;  %v462_v23 = vpop.f32.mrf.mxu1 }
  0xd2   : > { %v610_v25 = vmul.f32 %v578_v14, %v441_v62  ;;  %v618_v26 = vmul.f32 %v586_v15, %v461_v63  ;;  %v443_v27 = vadd.f32 %v1102_v24, %v442_v22  ;;  %v463_v28 = vadd.f32 %v1102_v24, %v462_v23 }
  0xd3   : > { %v657_v29 = vmul.f32 0.16666667, %v625_v18  ;;  %v665_v30 = vmul.f32 0.16666667, %v633_v19  ;;  %v530_v31 = vadd.f32 3.0, %v481_v20  ;;  %v538_v32 = vadd.f32 3.0, %v501_v21 }
  0xd4   : > { %v642_v33 = vmul.f32 0.16666667, %v610_v25  ;;  %v650_v34 = vmul.f32 0.16666667, %v618_v26  ;;  %v515_v35 = vadd.f32 3.0, %v443_v27  ;;  %v523_v36 = vadd.f32 3.0, %v463_v28 }
  0xd5   : > { %689 = vst [vmem:[%s1114_s18 + $0x98] sm:$0xff] %v657_v29  ;;  %v562_v37 = vmax.f32 %v530_v31, 0.0  ;;  %v570_v38 = vmax.f32 %v538_v32, 0.0 }
  0xd6   : > { %697 = vst [vmem:[%s1114_s18 + $0xd8] sm:$0xff] %v665_v30  ;;  %v547_v39 = vmax.f32 %v515_v35, 0.0  ;;  %v555_v40 = vmax.f32 %v523_v36, 0.0 }
  0xd7   : > { %674 = vst [vmem:[%s1114_s18 + $0x20] sm:$0xff] %v642_v33  ;;  %v594_v41 = vmin.f32 %v562_v37, 6.0  ;;  %v602_v42 = vmin.f32 %v570_v38, 6.0 }
  0xd8   : > { %682 = vst [vmem:[%s1114_s18 + $0x60] sm:$0xff] %v650_v34  ;;  %v579_v43 = vmin.f32 %v547_v39, 6.0  ;;  %v587_v44 = vmin.f32 %v555_v40, 6.0  ;;  %v482_v45 = vpop.f32.mrf.mxu2  ;;  %v502_v46 = vpop.f32.mrf.mxu3 }
  0xd9   : > { %v626_v47 = vmul.f32 %v594_v41, %v481_v20  ;;  %v634_v48 = vmul.f32 %v602_v42, %v501_v21  ;;  %v483_v49 = vadd.f32 %v1102_v24, %v482_v45  ;;  %v503_v50 = vadd.f32 %v1102_v24, %v502_v46  ;;  %v445_v51 = vpop.f32.mrf.mxu0  ;;  %v465_v52 = vpop.f32.mrf.mxu1 }
  0xda   : > { %v611_v53 = vmul.f32 %v579_v43, %v443_v27  ;;  %v619_v54 = vmul.f32 %v587_v44, %v463_v28  ;;  %v446_v55 = vadd.f32 %v1102_v24, %v445_v51  ;;  %v466_v56 = vadd.f32 %v1102_v24, %v465_v52 }
  0xdb   : > { %v658_v57 = vmul.f32 0.16666667, %v626_v47  ;;  %v666_v58 = vmul.f32 0.16666667, %v634_v48  ;;  %v531_v59 = vadd.f32 3.0, %v483_v49  ;;  %v539_v60 = vadd.f32 3.0, %v503_v50 }
  0xdc   : > { %v643_v61 = vmul.f32 0.16666667, %v611_v53  ;;  %v651_v62 = vmul.f32 0.16666667, %v619_v54  ;;  %v516_v63 = vadd.f32 3.0, %v446_v55  ;;  %v524_v0 = vadd.f32 3.0, %v466_v56 }
  0xdd   : > { %690 = vst [vmem:[%s1114_s18 + $0xa0] sm:$0xff] %v658_v57  ;;  %v563_v1 = vmax.f32 %v531_v59, 0.0  ;;  %v571_v2 = vmax.f32 %v539_v60, 0.0 }
  0xde   : > { %698 = vst [vmem:[%s1114_s18 + $0xe0] sm:$0xff] %v666_v58  ;;  %v548_v3 = vmax.f32 %v516_v63, 0.0  ;;  %v556_v4 = vmax.f32 %v524_v0, 0.0 }
  0xdf   : > { %675 = vst [vmem:[%s1114_s18 + $0x28] sm:$0xff] %v643_v61  ;;  %v595_v5 = vmin.f32 %v563_v1, 6.0  ;;  %v603_v6 = vmin.f32 %v571_v2, 6.0 }
  0xe0   : > { %683 = vst [vmem:[%s1114_s18 + $0x68] sm:$0xff] %v651_v62  ;;  %v580_v7 = vmin.f32 %v548_v3, 6.0  ;;  %v588_v8 = vmin.f32 %v556_v4, 6.0  ;;  %v485_v9 = vpop.f32.mrf.mxu2  ;;  %v505_v10 = vpop.f32.mrf.mxu3 }
  0xe1   : > { %v627_v11 = vmul.f32 %v595_v5, %v483_v49  ;;  %v635_v12 = vmul.f32 %v603_v6, %v503_v50  ;;  %v486_v13 = vadd.f32 %v1102_v24, %v485_v9  ;;  %v506_v14 = vadd.f32 %v1102_v24, %v505_v10  ;;  %v447_v15 = vpop.f32.mrf.mxu0  ;;  %v467_v16 = vpop.f32.mrf.mxu1 }
  0xe2   : > { %v612_v17 = vmul.f32 %v580_v7, %v446_v55  ;;  %v620_v18 = vmul.f32 %v588_v8, %v466_v56  ;;  %v448_v19 = vadd.f32 %v1102_v24, %v447_v15  ;;  %v468_v20 = vadd.f32 %v1102_v24, %v467_v16 }
  0xe3   : > { %v659_v21 = vmul.f32 0.16666667, %v627_v11  ;;  %v667_v22 = vmul.f32 0.16666667, %v635_v12  ;;  %v532_v23 = vadd.f32 3.0, %v486_v13  ;;  %v540_v25 = vadd.f32 3.0, %v506_v14 }
  0xe4   : > { %v644_v26 = vmul.f32 0.16666667, %v612_v17  ;;  %v652_v27 = vmul.f32 0.16666667, %v620_v18  ;;  %v517_v28 = vadd.f32 3.0, %v448_v19  ;;  %v525_v29 = vadd.f32 3.0, %v468_v20 }
  0xe5   : > { %691 = vst [vmem:[%s1114_s18 + $0xa8] sm:$0xff] %v659_v21  ;;  %v564_v30 = vmax.f32 %v532_v23, 0.0  ;;  %v572_v31 = vmax.f32 %v540_v25, 0.0 }
  0xe6   : > { %699 = vst [vmem:[%s1114_s18 + $0xe8] sm:$0xff] %v667_v22  ;;  %v549_v32 = vmax.f32 %v517_v28, 0.0  ;;  %v557_v33 = vmax.f32 %v525_v29, 0.0 }
  0xe7   : > { %676 = vst [vmem:[%s1114_s18 + $0x30] sm:$0xff] %v644_v26  ;;  %v596_v34 = vmin.f32 %v564_v30, 6.0  ;;  %v604_v35 = vmin.f32 %v572_v31, 6.0 }
  0xe8   : > { %684 = vst [vmem:[%s1114_s18 + $0x70] sm:$0xff] %v652_v27  ;;  %v581_v36 = vmin.f32 %v549_v32, 6.0  ;;  %v589_v37 = vmin.f32 %v557_v33, 6.0  ;;  %v487_v38 = vpop.f32.mrf.mxu2  ;;  %v507_v39 = vpop.f32.mrf.mxu3 }
  0xe9   : > { %v628_v40 = vmul.f32 %v596_v34, %v486_v13  ;;  %v636_v41 = vmul.f32 %v604_v35, %v506_v14  ;;  %v488_v42 = vadd.f32 %v1102_v24, %v487_v38  ;;  %v508_v43 = vadd.f32 %v1102_v24, %v507_v39 }
  0xea   : > { %v613_v44 = vmul.f32 %v581_v36, %v448_v19  ;;  %v621_v45 = vmul.f32 %v589_v37, %v468_v20 }
  0xeb   : > { %v660_v46 = vmul.f32 0.16666667, %v628_v40  ;;  %v668_v47 = vmul.f32 0.16666667, %v636_v41  ;;  %v533_v48 = vadd.f32 3.0, %v488_v42  ;;  %v541_v49 = vadd.f32 3.0, %v508_v43 }
  0xec   : > { %v645_v50 = vmul.f32 0.16666667, %v613_v44  ;;  %v653_v51 = vmul.f32 0.16666667, %v621_v45 }
  0xed   : > { %692 = vst [vmem:[%s1114_s18 + $0xb0] sm:$0xff] %v660_v46  ;;  %v565_v52 = vmax.f32 %v533_v48, 0.0  ;;  %v573_v53 = vmax.f32 %v541_v49, 0.0 }
  0xee   : > { %700 = vst [vmem:[%s1114_s18 + $0xf0] sm:$0xff] %v668_v47 }
  0xef   : > { %677 = vst [vmem:[%s1114_s18 + $0x38] sm:$0xff] %v645_v50  ;;  %v597_v54 = vmin.f32 %v565_v52, 6.0  ;;  %v605_v55 = vmin.f32 %v573_v53, 6.0 }
  0xf0   : > { %685 = vst [vmem:[%s1114_s18 + $0x78] sm:$0xff] %v653_v51 }
  0xf1   : > { %v629_v24 = vmul.f32 %v597_v54, %v488_v42  ;;  %v637_v56 = vmul.f32 %v605_v55, %v508_v43 }
  0xf3   : > { %v661_v57 = vmul.f32 0.16666667, %v629_v24  ;;  %v669_v58 = vmul.f32 0.16666667, %v637_v56 }
  0xf5   : > { %693 = vst [vmem:[%s1114_s18 + $0xb8] sm:$0xff] %v661_v57 }
  0xf6   : > { %701 = vst [vmem:[%s1114_s18 + $0xf8] sm:$0xff] %v669_v58 }
  0xf7 PF: > { %s13_s14 = sadd.s32 1, %s1008_s14   ;;  %s1187_s12 = smov %s1004_s13 }
  0xf8   : > { %p10_p5 = scmp.ge.s32.totalorder %s13_s14, 4   ;;  %s1188_s13 = smov %s1190_s15 }
  0xfa   :  { %12 = sbr.rel (!%p10_p5) target bundleno = 2 (0x2), region = 68 }

// kernel: model.3
= control target key start
LH: loop header
LB: loop body
LE: loop exit
PB: predicated region body
PF: predicated region fallthrough
CT: control target
= control target key end

     0   :  { %8 = vsyncpa [#allocation4], 0  ;;  %s1045_s12 = smov 0   ;;  %s1047_s13 = smov 0   ;;  %s1159_s0 = inlined_call_operand.vmem [shape: bf16[128,384], index: 0, kind: input, shape index: {}]   ;;  %s1160_s1 = inlined_call_operand.vmem [shape: bf16[384,128], index: 1, kind: input, shape index: {}]   ;;  %s1161_s2 = inlined_call_operand.vmem [shape: f32[1,128], index: 2, kind: input, shape index: {}]   ;;  %s1162_s3 = inlined_call_operand.hbm [shape: f32[128,128], index: 3, kind: output, shape index: {}]  }
   0x1   :  { %s1049_s14 = smov 0   ;;  %s1051_s15 = smov 0  }
   0x2   :  { %s1053_s16 = smov 0  }
   0x3 LB: > { %s778_s17 = sadd.s32 4294967295, %s1019_s16   ;;  %s26_s18 = sadd.s32 1, %s1015_s15  ;;  %s1019_s16 = sphi %s1053_s16, %s14_s16   ;;  %s1015_s15 = sphi %s1051_s15, %s1166_s15   ;;  %s1011_s14 = sphi %s1049_s14, %s1165_s14   ;;  %s1007_s13 = sphi %s1047_s13, %s1164_s13   ;;  %s1003_s12 = sphi %s1045_s12, %s1163_s12  }
   0x4   : > { %p27_p0 = scmp.ge.s32.totalorder %s26_s18, 3  ;;  %p49_p1 = scmp.ne.s32.totalorder %s1007_s13, %s1003_s12 }
   0x5   : > { %p50_p2 = scmp.eq.s32.totalorder %s1019_s16, 0  ;;  %s42_s20 = sadd.s32 1, %s1007_s13 }
   0x6   : > { %s1168_s18 = smov (%p27_p0, %s26_s18), 0  ;;  %p781_p5 = scmp.ge.s32.totalorder %s1019_s16, 3 }
   0x7   : > { %p51_p3 = por %p50_p2, %p49_p1  ;;  %s38_s19 = ssub.s32 %s1015_s15, %s1168_s18 }
   0x8   : > { %p40_p4 = scmp.eq.s32.totalorder %s38_s19, 0  ;;  %163 = sbr.rel (%p781_p5) target bundleno = 33 (0x21), region = 20 }
   0xa   : > { %s1081_s21 = scalar_select %p40_p4, %s1007_s13, %s42_s20  }
   0xd   : > { %166 = sbr.rel (!%p51_p3) target bundleno = 33 (0x21), region = 24  ;;  %s168_s22 = sand.u32 (%p51_p3), 1, %s1007_s13  }
   0xe   : > { %s783_s23 = sshll.u32 (%p51_p3), %s1015_s15, 2  ;;  %s782_s24 = sshll.u32 (%p51_p3), %s168_s22, 6 }
   0xf   : > { %s1089_s27 = scalar_lea.vmem (%p51_p3), %s1159_s0, %s783_s23  ;;  %s170_s28 = scalar_lea.vmem (%p51_p3), [#allocation2], %s782_s24 }
  0x10   : > { %v192_v0 = vld [vmem:[%s1089_s27] sm:$0xf] (%p51_p3)  ;;  %v194_v1 = vld [vmem:[%s1089_s27 + $0xc] sm:$0xf] (%p51_p3)  ;;  %v196_v2 = vld [vmem:[%s1089_s27 + $0x18] sm:$0xf] (%p51_p3) }
  0x11   : > { %193 = vst [vmem:[%s170_s28] sm:$0xf] (%p51_p3), %v192_v0  ;;  %v198_v3 = vld [vmem:[%s1089_s27 + $0x24] sm:$0xf] (%p51_p3)  ;;  %v200_v4 = vld [vmem:[%s1089_s27 + $0x30] sm:$0xf] (%p51_p3) }
  0x12   : > { %195 = vst [vmem:[%s170_s28 + $0x4] sm:$0xf] %v194_v1  ;;  %v202_v5 = vld [vmem:[%s1089_s27 + $0x3c] sm:$0xf]  ;;  %v204_v6 = vld [vmem:[%s1089_s27 + $0x48] sm:$0xf] }
  0x13   : > { %197 = vst [vmem:[%s170_s28 + $0x8] sm:$0xf] %v196_v2  ;;  %v206_v7 = vld [vmem:[%s1089_s27 + $0x54] sm:$0xf]  ;;  %v208_v8 = vld [vmem:[%s1089_s27 + $0x60] sm:$0xf] }
  0x14   : > { %199 = vst [vmem:[%s170_s28 + $0xc] sm:$0xf] %v198_v3  ;;  %v210_v9 = vld [vmem:[%s1089_s27 + $0x6c] sm:$0xf]  ;;  %v212_v10 = vld [vmem:[%s1089_s27 + $0x78] sm:$0xf] }
  0x15   : > { %201 = vst [vmem:[%s170_s28 + $0x10] sm:$0xf] %v200_v4  ;;  %v214_v11 = vld [vmem:[%s1089_s27 + $0x84] sm:$0xf]  ;;  %v216_v12 = vld [vmem:[%s1089_s27 + $0x90] sm:$0xf] }
  0x16   : > { %203 = vst [vmem:[%s170_s28 + $0x14] sm:$0xf] %v202_v5  ;;  %v218_v13 = vld [vmem:[%s1089_s27 + $0x9c] sm:$0xf]  ;;  %v220_v14 = vld [vmem:[%s1089_s27 + $0xa8] sm:$0xf] }
  0x17   : > { %205 = vst [vmem:[%s170_s28 + $0x18] sm:$0xf] %v204_v6  ;;  %v222_v15 = vld [vmem:[%s1089_s27 + $0xb4] sm:$0xf] }
  0x18   : > { %207 = vst [vmem:[%s170_s28 + $0x1c] sm:$0xf] %v206_v7 }
  0x19   : > { %209 = vst [vmem:[%s170_s28 + $0x20] sm:$0xf] %v208_v8 }
  0x1a   : > { %211 = vst [vmem:[%s170_s28 + $0x24] sm:$0xf] %v210_v9 }
  0x1b   : > { %213 = vst [vmem:[%s170_s28 + $0x28] sm:$0xf] %v212_v10 }
  0x1c   : > { %215 = vst [vmem:[%s170_s28 + $0x2c] sm:$0xf] %v214_v11 }
  0x1d   : > { %217 = vst [vmem:[%s170_s28 + $0x30] sm:$0xf] %v216_v12 }
  0x1e   : > { %219 = vst [vmem:[%s170_s28 + $0x34] sm:$0xf] %v218_v13 }
  0x1f   : > { %221 = vst [vmem:[%s170_s28 + $0x38] sm:$0xf] %v220_v14 }
  0x20   : > { %223 = vst [vmem:[%s170_s28 + $0x3c] sm:$0xf] %v222_v15 }
  0x21 PF: > { %p784_p6 = scmp.ge.s32.totalorder %s1019_s16, 1  ;;  %p290_p7 = scmp.lt.s32.totalorder %s1019_s16, 4 }
  0x23   : > { %p291_p8 = pnand %p784_p6, %p290_p7 }
  0x24   : > { %s297_s29 = sand.u32 (!%p291_p8), 1, %s1003_s12   ;;  %s786_s30 = sshll.u32 (!%p291_p8), %s1011_s14, 4 }
  0x25   : > { %294 = sbr.rel (%p291_p8) target bundleno = 287 (0x11f), region = 69  ;;  %s785_s4 = sshll.u32 (!%p291_p8), %s297_s29, 6 }
  0x26   : > { %p328_p9 = scmp.lt.s32.totalorder (!%p291_p8), %s786_s30, 47  ;;  %s1116_s9 = scalar_lea.vmem (!%p291_p8), [#allocation2], %s785_s4 }
  0x27   : > { %p788_p10 = scmp.ne.s32.totalorder (!%p291_p8), %s1011_s14, 0 }
  0x2a   : > { %s1170_s30 = smov (!%p328_p9, %s786_s30), 47  ;;  %343 = sbr.rel (%p788_p10) target bundleno = 64 (0x40), region = 77 }
  0x2b   : > { %s787_s5 = sshll.u32 %s1170_s30, 2 }
  0x2c   : > { %s1114_s8 = scalar_lea.vmem %s1160_s1, %s787_s5 }
  0x2f   : > { %v1021_v16 = vmov 0.0  }
  0x30   : > { %344 = vst [vmem:[#allocation3] sm:$0xff] %v1021_v16 }
  0x31   : > { %345 = vst [vmem:[#allocation3 + $0x8] sm:$0xff] %v1021_v16 }
  0x32   : > { %346 = vst [vmem:[#allocation3 + $0x10] sm:$0xff] %v1021_v16 }
  0x33   : > { %347 = vst [vmem:[#allocation3 + $0x18] sm:$0xff] %v1021_v16 }
  0x34   : > { %348 = vst [vmem:[#allocation3 + $0x20] sm:$0xff] %v1021_v16 }
  0x35   : > { %349 = vst [vmem:[#allocation3 + $0x28] sm:$0xff] %v1021_v16 }
  0x36   : > { %350 = vst [vmem:[#allocation3 + $0x30] sm:$0xff] %v1021_v16 }
  0x37   : > { %351 = vst [vmem:[#allocation3 + $0x38] sm:$0xff] %v1021_v16 }
  0x38   : > { %352 = vst [vmem:[#allocation3 + $0x40] sm:$0xff] %v1021_v16 }
  0x39   : > { %353 = vst [vmem:[#allocation3 + $0x48] sm:$0xff] %v1021_v16 }
  0x3a   : > { %354 = vst [vmem:[#allocation3 + $0x50] sm:$0xff] %v1021_v16 }
  0x3b   : > { %355 = vst [vmem:[#allocation3 + $0x58] sm:$0xff] %v1021_v16 }
  0x3c   : > { %356 = vst [vmem:[#allocation3 + $0x60] sm:$0xff] %v1021_v16 }
  0x3d   : > { %357 = vst [vmem:[#allocation3 + $0x68] sm:$0xff] %v1021_v16 }
  0x3e   : > { %358 = vst [vmem:[#allocation3 + $0x70] sm:$0xff] %v1021_v16 }
  0x3f   : > { %359 = vst [vmem:[#allocation3 + $0x78] sm:$0xff] %v1021_v16 }
  0x40 PF: > { %v873_v17 = vld [vmem:[%s1114_s8 + $0x38] sm:$0xff]  ;;  %v872_v18 = vld [vmem:[%s1114_s8 + $0x30] sm:$0xff]  ;;  %v871_v19 = vld [vmem:[%s1114_s8 + $0x28] sm:$0xff]  ;;  %p853_p11 = scmp.ne.s32.totalorder %s1011_s14, 2 }
  0x41   : > { %504 = vmatpush.bf16.msra.mxu0 %v873_v17  ;;  %874 = vmatpush.bf16.msra.mxu1 %v873_v17  ;;  %v870_v20 = vld [vmem:[%s1114_s8 + $0x20] sm:$0xff]  ;;  %v869_v21 = vld [vmem:[%s1114_s8 + $0x18] sm:$0xff]  ;;  %v868_v22 = vld [vmem:[%s1114_s8 + $0x10] sm:$0xff] }
  0x42   : > { %875 = vmatpush.bf16.msra.mxu2 %v873_v17  ;;  %876 = vmatpush.bf16.msra.mxu3 %v873_v17  ;;  %v867_v23 = vld [vmem:[%s1114_s8 + $0x8] sm:$0xff]  ;;  %v866_v24 = vld [vmem:[%s1114_s8] sm:$0xff]  ;;  %v860_v26 = vld [vmem:[%s1116_s9 + $0x10] sm:$0xff] }
  0x43   : > { %v858_v25 = vld [vmem:[%s1116_s9] sm:$0xff]  ;;  %v864_v28 = vld [vmem:[%s1116_s9 + $0x30] sm:$0xff]  ;;  %v859_v29 = vld [vmem:[%s1116_s9 + $0x8] sm:$0xff] }
  0x44   : > { %v862_v27 = vld [vmem:[%s1116_s9 + $0x20] sm:$0xff]  ;;  %v861_v30 = vld [vmem:[%s1116_s9 + $0x18] sm:$0xff]  ;;  %v863_v31 = vld [vmem:[%s1116_s9 + $0x28] sm:$0xff] }
  0x45   : > { %505 = vmatpush.bf16.msra.mxu0 %v872_v18  ;;  %877 = vmatpush.bf16.msra.mxu1 %v872_v18  ;;  %v865_v32 = vld [vmem:[%s1116_s9 + $0x38] sm:$0xff]  ;;  %v360_v33 = vld [vmem:[#allocation3] sm:$0xff]  ;;  %v361_v41 = vld [vmem:[#allocation3 + $0x8] sm:$0xff] }
  0x46   : > { %878 = vmatpush.bf16.msra.mxu2 %v872_v18  ;;  %879 = vmatpush.bf16.msra.mxu3 %v872_v18  ;;  %v364_v34 = vld [vmem:[#allocation3 + $0x20] sm:$0xff]  ;;  %v365_v42 = vld [vmem:[#allocation3 + $0x28] sm:$0xff]  ;;  %v362_v53 = vld [vmem:[#allocation3 + $0x10] sm:$0xff] }
  0x47   : > { %v368_v39 = vld [vmem:[#allocation3 + $0x40] sm:$0xff]  ;;  %v369_v51 = vld [vmem:[#allocation3 + $0x48] sm:$0xff]  ;;  %v366_v54 = vld [vmem:[#allocation3 + $0x30] sm:$0xff] }
  0x48   : > { %v372_v40 = vld [vmem:[#allocation3 + $0x60] sm:$0xff]  ;;  %v373_v52 = vld [vmem:[#allocation3 + $0x68] sm:$0xff]  ;;  %v370_v63 = vld [vmem:[#allocation3 + $0x50] sm:$0xff] }
  0x49   : > { %506 = vmatpush.bf16.msra.mxu0 %v871_v19  ;;  %880 = vmatpush.bf16.msra.mxu1 %v871_v19  ;;  %v374_v0 = vld [vmem:[#allocation3 + $0x70] sm:$0xff]  ;;  %v363_v1 = vld [vmem:[#allocation3 + $0x18] sm:$0xff] }
  0x4a   : > { %881 = vmatpush.bf16.msra.mxu2 %v871_v19  ;;  %882 = vmatpush.bf16.msra.mxu3 %v871_v19  ;;  %v367_v2 = vld [vmem:[#allocation3 + $0x38] sm:$0xff] }
  0x4b   : > { %v371_v11 = vld [vmem:[#allocation3 + $0x58] sm:$0xff] }
  0x4c   : > { %v375_v12 = vld [vmem:[#allocation3 + $0x78] sm:$0xff] }
  0x4d   : > { %507 = vmatpush.bf16.msra.mxu0 %v870_v20  ;;  %883 = vmatpush.bf16.msra.mxu1 %v870_v20 }
  0x4e   : > { %884 = vmatpush.bf16.msra.mxu2 %v870_v20  ;;  %885 = vmatpush.bf16.msra.mxu3 %v870_v20 }
  0x51   : > { %508 = vmatpush.bf16.msra.mxu0 %v869_v21  ;;  %886 = vmatpush.bf16.msra.mxu1 %v869_v21 }
  0x52   : > { %887 = vmatpush.bf16.msra.mxu2 %v869_v21  ;;  %888 = vmatpush.bf16.msra.mxu3 %v869_v21 }
  0x55   : > { %509 = vmatpush.bf16.msra.mxu0 %v868_v22  ;;  %889 = vmatpush.bf16.msra.mxu1 %v868_v22 }
  0x56   : > { %890 = vmatpush.bf16.msra.mxu2 %v868_v22  ;;  %891 = vmatpush.bf16.msra.mxu3 %v868_v22 }
  0x59   : > { %510 = vmatpush.bf16.msra.mxu0 %v867_v23  ;;  %892 = vmatpush.bf16.msra.mxu1 %v867_v23 }
  0x5a   : > { %893 = vmatpush.bf16.msra.mxu2 %v867_v23  ;;  %894 = vmatpush.bf16.msra.mxu3 %v867_v23 }
  0x5d   : > { %511 = vmatpush.bf16.msra.mxu0 %v866_v24  ;;  %895 = vmatpush.bf16.msra.mxu1 %v866_v24 }
  0x5e   : > { %896 = vmatpush.bf16.msra.mxu2 %v866_v24  ;;  %897 = vmatpush.bf16.msra.mxu3 %v866_v24 }
  0x60   : > { %512 = vmatmul.bf16.vlgmr.msra.gmra.mxu0 %v858_v25  ;;  %522 = vmatmul.bf16.vlgmr.msra.gmra.mxu1 %v860_v26 }
  0x61   : > { %532 = vmatmul.bf16.vlgmr.msra.gmra.mxu2 %v862_v27  ;;  %542 = vmatmul.bf16.vlgmr.msra.gmra.mxu3 %v864_v28 }
  0x70   : > { %517 = vmatmul.bf16.gmra.mxu0 %v859_v29  ;;  %527 = vmatmul.bf16.gmra.mxu1 %v861_v30 }
  0x71   : > { %537 = vmatmul.bf16.gmra.mxu2 %v863_v31  ;;  %547 = vmatmul.bf16.gmra.mxu3 %v865_v32 }
  0xdd   : > { %v513_v35 = vpop.f32.mrf.mxu0  ;;  %v523_v36 = vpop.f32.mrf.mxu1 }
  0xde   : > { %v553_v37 = vadd.f32 %v513_v35, %v360_v33  ;;  %v557_v38 = vadd.f32 %v523_v36, %v364_v34 }
  0xe0   : > { %569 = vst [vmem:[#allocation3] sm:$0xff] %v553_v37 }
  0xe1   : > { %573 = vst [vmem:[#allocation3 + $0x20] sm:$0xff] %v557_v38 }
  0xe4   : > { %v533_v43 = vpop.f32.mrf.mxu2  ;;  %v543_v44 = vpop.f32.mrf.mxu3 }
  0xe5   : > { %v561_v45 = vadd.f32 %v533_v43, %v368_v39  ;;  %v565_v46 = vadd.f32 %v543_v44, %v372_v40  ;;  %v515_v47 = vpop.f32.mrf.mxu0  ;;  %v525_v48 = vpop.f32.mrf.mxu1 }
  0xe6   : > { %v554_v49 = vadd.f32 %v515_v47, %v361_v41  ;;  %v558_v50 = vadd.f32 %v525_v48, %v365_v42 }
  0xe7   : > { %577 = vst [vmem:[#allocation3 + $0x40] sm:$0xff] %v561_v45 }
  0xe8   : > { %581 = vst [vmem:[#allocation3 + $0x60] sm:$0xff] %v565_v46 }
  0xe9   : > { %570 = vst [vmem:[#allocation3 + $0x8] sm:$0xff] %v554_v49 }
  0xea   : > { %574 = vst [vmem:[#allocation3 + $0x28] sm:$0xff] %v558_v50 }
  0xec   : > { %v535_v55 = vpop.f32.mrf.mxu2  ;;  %v545_v56 = vpop.f32.mrf.mxu3 }
  0xed   : > { %v562_v57 = vadd.f32 %v535_v55, %v369_v51  ;;  %v566_v58 = vadd.f32 %v545_v56, %v373_v52  ;;  %v518_v59 = vpop.f32.mrf.mxu0  ;;  %v528_v60 = vpop.f32.mrf.mxu1 }
  0xee   : > { %v555_v61 = vadd.f32 %v518_v59, %v362_v53  ;;  %v559_v62 = vadd.f32 %v528_v60, %v366_v54 }
  0xef   : > { %578 = vst [vmem:[#allocation3 + $0x48] sm:$0xff] %v562_v57 }
  0xf0   : > { %582 = vst [vmem:[#allocation3 + $0x68] sm:$0xff] %v566_v58 }
  0xf1   : > { %571 = vst [vmem:[#allocation3 + $0x10] sm:$0xff] %v555_v61 }
  0xf2   : > { %575 = vst [vmem:[#allocation3 + $0x30] sm:$0xff] %v559_v62 }
  0xf4   : > { %v538_v3 = vpop.f32.mrf.mxu2  ;;  %v548_v4 = vpop.f32.mrf.mxu3 }
  0xf5   : > { %v563_v5 = vadd.f32 %v538_v3, %v370_v63  ;;  %v567_v6 = vadd.f32 %v548_v4, %v374_v0  ;;  %v520_v7 = vpop.f32.mrf.mxu0  ;;  %v530_v8 = vpop.f32.mrf.mxu1 }
  0xf6   : > { %v556_v9 = vadd.f32 %v520_v7, %v363_v1  ;;  %v560_v10 = vadd.f32 %v530_v8, %v367_v2 }
  0xf7   : > { %579 = vst [vmem:[#allocation3 + $0x50] sm:$0xff] %v563_v5 }
  0xf8   : > { %583 = vst [vmem:[#allocation3 + $0x70] sm:$0xff] %v567_v6 }
  0xf9   : > { %572 = vst [vmem:[#allocation3 + $0x18] sm:$0xff] %v556_v9 }
  0xfa   : > { %576 = vst [vmem:[#allocation3 + $0x38] sm:$0xff] %v560_v10 }
  0xfc   : > { %v540_v13 = vpop.f32.mrf.mxu2  ;;  %v550_v14 = vpop.f32.mrf.mxu3  ;;  %588 = sbr.rel (%p853_p11) target bundleno = 281 (0x119), region = 81 }
  0xfd   : > { %v564_v15 = vadd.f32 %v540_v13, %v371_v11  ;;  %v568_v16 = vadd.f32 %v550_v14, %v375_v12 }
  0xff   : > { %580 = vst [vmem:[#allocation3 + $0x58] sm:$0xff] %v564_v15 }
 0x100   : > { %584 = vst [vmem:[#allocation3 + $0x78] sm:$0xff] %v568_v16 }
 0x101   : > { %v589_v17 = vld [vmem:[#allocation3] sm:$0xff]  ;;  %v590_v19 = vld [vmem:[#allocation3 + $0x8] sm:$0xff]  ;;  %v591_v20 = vld [vmem:[#allocation3 + $0x10] sm:$0xff] }
 0x102   : > { %v948_v18 = vld [vmem:[%s1161_s2] ss:$0 sm:$0xff]  ;;  %v592_v21 = vld [vmem:[#allocation3 + $0x18] sm:$0xff]  ;;  %v594_v27 = vld [vmem:[#allocation3 + $0x28] sm:$0xff] }
 0x103   : > { %v609_v22 = vadd.f32 %v948_v18, %v589_v17  ;;  %v610_v23 = vadd.f32 %v948_v18, %v590_v19  ;;  %v611_v24 = vadd.f32 %v948_v18, %v591_v20  ;;  %v612_v25 = vadd.f32 %v948_v18, %v592_v21  ;;  %v593_v26 = vld [vmem:[#allocation3 + $0x20] sm:$0xff]  ;;  %v595_v28 = vld [vmem:[#allocation3 + $0x30] sm:$0xff]  ;;  %v596_v32 = vld [vmem:[#allocation3 + $0x38] sm:$0xff] }
 0x104   : > { %v613_v29 = vadd.f32 %v948_v18, %v593_v26  ;;  %v614_v30 = vadd.f32 %v948_v18, %v594_v27  ;;  %v615_v31 = vadd.f32 %v948_v18, %v595_v28  ;;  %v597_v37 = vld [vmem:[#allocation3 + $0x40] sm:$0xff]  ;;  %v616_v41 = vadd.f32 %v948_v18, %v596_v32  ;;  %v598_v42 = vld [vmem:[#allocation3 + $0x48] sm:$0xff]  ;;  %v599_v43 = vld [vmem:[#allocation3 + $0x50] sm:$0xff] }
 0x105   : > { %v625_v33 = vmax.f32 %v609_v22, 0.0  ;;  %v626_v34 = vmax.f32 %v610_v23, 0.0  ;;  %v627_v35 = vmax.f32 %v611_v24, 0.0  ;;  %v628_v36 = vmax.f32 %v612_v25, 0.0  ;;  %v601_v48 = vld [vmem:[#allocation3 + $0x60] sm:$0xff]  ;;  %v602_v49 = vld [vmem:[#allocation3 + $0x68] sm:$0xff] }
 0x106   : > { %v629_v38 = vmax.f32 %v613_v29, 0.0  ;;  %v630_v39 = vmax.f32 %v614_v30, 0.0  ;;  %v631_v40 = vmax.f32 %v615_v31, 0.0  ;;  %v600_v44 = vld [vmem:[#allocation3 + $0x58] sm:$0xff]  ;;  %v632_v52 = vmax.f32 %v616_v41, 0.0  ;;  %v603_v53 = vld [vmem:[#allocation3 + $0x70] sm:$0xff] }
 0x107   : > { %v641_v45 = vmin.f32 %v625_v33, 6.0  ;;  %v642_v46 = vmin.f32 %v626_v34, 6.0  ;;  %v643_v47 = vmin.f32 %v627_v35, 6.0  ;;  %v644_v50 = vmin.f32 %v628_v36, 6.0  ;;  %v604_v58 = vld [vmem:[#allocation3 + $0x78] sm:$0xff] }
 0x108   : > { %v645_v51 = vmin.f32 %v629_v38, 6.0  ;;  %v617_v54 = vadd.f32 %v948_v18, %v597_v37  ;;  %v618_v55 = vadd.f32 %v948_v18, %v598_v42  ;;  %v619_v56 = vadd.f32 %v948_v18, %v599_v43 }
 0x109   : > { %657 = vst [vmem:[#allocation3] sm:$0xff] %v641_v45  ;;  %v620_v57 = vadd.f32 %v948_v18, %v600_v44  ;;  %v646_v59 = vmin.f32 %v630_v39, 6.0  ;;  %v647_v60 = vmin.f32 %v631_v40, 6.0  ;;  %v621_v61 = vadd.f32 %v948_v18, %v601_v48 }
 0x10a   : > { %658 = vst [vmem:[#allocation3 + $0x8] sm:$0xff] %v642_v46  ;;  %v622_v62 = vadd.f32 %v948_v18, %v602_v49  ;;  %v633_v63 = vmax.f32 %v617_v54, 0.0  ;;  %v634_v0 = vmax.f32 %v618_v55, 0.0  ;;  %v635_v1 = vmax.f32 %v619_v56, 0.0 }
 0x10b   : > { %659 = vst [vmem:[#allocation3 + $0x10] sm:$0xff] %v643_v47  ;;  %v623_v2 = vadd.f32 %v948_v18, %v603_v53  ;;  %v648_v3 = vmin.f32 %v632_v52, 6.0  ;;  %v636_v4 = vmax.f32 %v620_v57, 0.0  ;;  %v624_v5 = vadd.f32 %v948_v18, %v604_v58 }
 0x10c   : > { %660 = vst [vmem:[#allocation3 + $0x18] sm:$0xff] %v644_v50  ;;  %v649_v6 = vmin.f32 %v633_v63, 6.0  ;;  %v637_v7 = vmax.f32 %v621_v61, 0.0  ;;  %v650_v8 = vmin.f32 %v634_v0, 6.0  ;;  %v638_v9 = vmax.f32 %v622_v62, 0.0 }
 0x10d   : > { %661 = vst [vmem:[#allocation3 + $0x20] sm:$0xff] %v645_v51  ;;  %v651_v10 = vmin.f32 %v635_v1, 6.0  ;;  %v639_v11 = vmax.f32 %v623_v2, 0.0  ;;  %v652_v12 = vmin.f32 %v636_v4, 6.0  ;;  %v640_v13 = vmax.f32 %v624_v5, 0.0 }
 0x10e   : > { %662 = vst [vmem:[#allocation3 + $0x28] sm:$0xff] %v646_v59  ;;  %v653_v14 = vmin.f32 %v637_v7, 6.0  ;;  %v654_v15 = vmin.f32 %v638_v9, 6.0 }
 0x10f   : > { %663 = vst [vmem:[#allocation3 + $0x30] sm:$0xff] %v647_v60  ;;  %v655_v16 = vmin.f32 %v639_v11, 6.0  ;;  %v656_v17 = vmin.f32 %v640_v13, 6.0 }
 0x110   : > { %664 = vst [vmem:[#allocation3 + $0x38] sm:$0xff] %v648_v3 }
 0x111   : > { %665 = vst [vmem:[#allocation3 + $0x40] sm:$0xff] %v649_v6 }
 0x112   : > { %666 = vst [vmem:[#allocation3 + $0x48] sm:$0xff] %v650_v8 }
 0x113   : > { %667 = vst [vmem:[#allocation3 + $0x50] sm:$0xff] %v651_v10 }
 0x114   : > { %668 = vst [vmem:[#allocation3 + $0x58] sm:$0xff] %v652_v12 }
 0x115   : > { %669 = vst [vmem:[#allocation3 + $0x60] sm:$0xff] %v653_v14 }
 0x116   : > { %670 = vst [vmem:[#allocation3 + $0x68] sm:$0xff] %v654_v15 }
 0x117   : > { %671 = vst [vmem:[#allocation3 + $0x70] sm:$0xff] %v655_v16 }
 0x118   : > { %672 = vst [vmem:[#allocation3 + $0x78] sm:$0xff] %v656_v17 }
 0x119 PF: > { %p902_p12 = scmp.eq.s32.totalorder %s778_s17, 2  ;;  %s684_s19 = sshll.u32 %s1162_s3, 4  ;;  %s685_s19 = int_to_ptr.hbm [resolvable:$true] %s684_s19 }
 0x11a   : > { %s1022_s20 = smov [#allocation3]   ;;  %s1023_s23 = smov 128  }
 0x11b   : > { %s682_s22 = sshll.u32 %s1022_s20, 4  ;;  %s1024_s24 = smov 8   ;;  %s683_s22 = int_to_ptr.vmem [resolvable:$true] %s682_s22 }
 0x11c   : > { %899 = dma.vmem_to_hbm [thread:$0]  (%p902_p12), %s683_s22, 2048, %s685_s19, [#allocation4], %s1023_s23, %s1023_s23, %s1024_s24  }
 0x11d   : > { %998 = dma.done.wait (%p902_p12), [#allocation4], 2048  }
 0x11e   : > { %1000 = vsyncadd (%p902_p12), [#allocation4], 4294965248 }
 0x11f PF: > { %s14_s16 = sadd.s32 1, %s1019_s16   ;;  %s1163_s12 = smov %s1007_s13 }
 0x120   : > { %p11_p13 = scmp.ge.s32.totalorder %s14_s16, 5   ;;  %s1164_s13 = smov %s1081_s21 }
 0x121   : > { %s1165_s14 = smov %s1015_s15  ;;  %s1166_s15 = smov %s1168_s18 }
 0x122   :  { %13 = sbr.rel (!%p11_p13) target bundleno = 3 (0x3), region = 120 }
 0x127   :  { %701 = vsyncpa [#allocation4], 1 }
 0x128   :  { %703 = vsyncpa [#allocation4 + $0x1], 1 }

</bundles_post_ra>
